<compile_context>
chip_gen: v7x
topology: tpu7x:2x2x1
jax: 0.10.0
libtpu: 0.0.40
codegen_flags: <defaults>
</compile_context>

<pallas_src>
import functools

import jax
import jax.numpy as jnp
from jax.experimental import pallas as pl
from jax.experimental.pallas import tpu as pltpu

LANES = 128        # vreg lane width
SUB = 8            # vreg sublane height
CHUNK_ROWS = 512   # inner accumulate chunk (256 KiB f32 temporaries)


def _num_tensorcores():
    """2 on chips with two TensorCores behind one device (v4/v5p/v7x), else 1."""
    try:
        kind = jax.devices()[0].device_kind.lower()
    except Exception:
        return 1
    if "lite" in kind or "v5e" in kind or "v6" in kind or "v2" in kind or "v3" in kind:
        return 1
    if "v4" in kind or "v5p" in kind or "v7" in kind:
        return 2
    return 1


def _mse_kernel(pred_ref, true_ref, out_ref, acc_ref, *,
                block_rows, chunk_rows, steps_per_core, valid_rows, needs_mask):
    core = pl.program_id(0)
    step = pl.program_id(1)

    # Zero this core's accumulator at the start of its row range.
    @pl.when(step == 0)
    def _():
        acc_ref[...] = jnp.zeros_like(acc_ref)

    block_start = (core * steps_per_core + step) * block_rows
    num_chunks = block_rows // chunk_rows
    fold = (chunk_rows % SUB == 0)

    def accumulate_chunk(off, masked):
        p = pred_ref[pl.ds(off, chunk_rows), :].astype(jnp.float32)
        t = true_ref[pl.ds(off, chunk_rows), :].astype(jnp.float32)
        d = p - t
        sq = d * d
        if masked:
            # (chunk_rows, 1) iota: 128x cheaper than a full-width iota; only
            # the final select is full-width.  Garbage in over-read / duplicate
            # rows (logical row >= valid_rows) is selected away, never summed.
            row_ids = block_start + off + jax.lax.broadcasted_iota(
                jnp.int32, (chunk_rows, 1), 0)
            sq = jnp.where(row_ids < valid_rows, sq, 0.0)
        if fold:
            # (chunk_rows,128) -> (8,128): pure VPU vreg adds, no XLU per step.
            acc_ref[...] += jnp.sum(sq.reshape(-1, SUB, LANES), axis=0)
        else:
            # Tiny single-block inputs only (rows not a multiple of 8).
            acc_ref[0:1, :] = acc_ref[0:1, :] + jnp.sum(sq, axis=0, keepdims=True)

    def run(masked):
        if num_chunks == 1:
            accumulate_chunk(0, masked)
        else:
            def body(c, carry):
                accumulate_chunk(pl.multiple_of(c * chunk_rows, chunk_rows), masked)
                return carry
            jax.lax.fori_loop(0, num_chunks, body, 0)

    if needs_mask:
        # Only the overshooting tail block (and any clamped duplicate block on
        # the second core) pays for masking; full blocks take the unmasked path.
        is_full = block_start + block_rows <= valid_rows

        @pl.when(is_full)
        def _():
            run(False)

        @pl.when(jnp.logical_not(is_full))
        def _():
            run(True)
    else:
        run(False)

    # Emit this core's (8,128) partial sum once, on its last step.
    @pl.when(step == pl.num_programs(1) - 1)
    def _():
        out_ref[...] = acc_ref[...]


def mse_loss(u_pred, u_true, *, tm=None):
    """Pallas MSE loss with reduction='mean' (matches torch.nn.MSELoss())."""
    assert u_pred.shape == u_true.shape, "MSELoss requires matching shapes"
    n = int(u_pred.size)
    assert n > 0

    flat_p = u_pred.reshape(-1)
    flat_t = u_true.reshape(-1)

    # Lane-aligned prefix goes through the kernel; the (<128-element) remainder
    # is summed with a tiny plain-jnp op — no full-array pad/copy in HBM.
    rows = n // LANES
    n_main = rows * LANES

    if n_main != n:
        tail_p = flat_p[n_main:].astype(jnp.float32)
        tail_t = flat_t[n_main:].astype(jnp.float32)
        tail_sum = jnp.sum((tail_p - tail_t) ** 2)
    else:
        tail_sum = jnp.float32(0.0)

    if rows == 0:
        # Fewer than 128 elements total: nothing lane-aligned to stream.
        return tail_sum / n

    if n_main != n:
        # TODO(synk): a truly zero-copy ragged path needs manual DMA via
        # memory_space=pl.ANY; this prefix slice may materialize a copy but
        # avoids padding + rewriting both full inputs.
        p2d = flat_p[:n_main].reshape(rows, LANES)
        t2d = flat_t[:n_main].reshape(rows, LANES)
    else:
        p2d = flat_p.reshape(rows, LANES)   # free: contiguous reshape
        t2d = flat_t.reshape(rows, LANES)

    itemsize = int(jnp.dtype(u_pred.dtype).itemsize)

    # Block rows: target ~4 MiB per input block (review: 2–4 MiB blocks reach
    # ~85%+ of HBM roofline; double-buffered total stays <= ~16 MiB, within
    # v5e/v6e scoped budgets and v7x's 64 MiB physical VMEM per TensorCore).
    if tm is None:
        tm = max(CHUNK_ROWS, (4 * 1024 * 1024) // (LANES * itemsize))
    tm = max(SUB, (tm // SUB) * SUB)
    if tm >= CHUNK_ROWS:
        tm = (tm // CHUNK_ROWS) * CHUNK_ROWS   # keep inner chunking exact

    block_rows = min(tm, rows)
    chunk_rows = CHUNK_ROWS if (block_rows % CHUNK_ROWS == 0) else block_rows

    blocks_total = pl.cdiv(rows, block_rows)
    num_cores = min(_num_tensorcores(), blocks_total)
    steps_per_core = pl.cdiv(blocks_total, num_cores)
    # Mask only needed when (cores x steps x block_rows) coverage overshoots
    # the real row count (ragged tail block / clamped duplicate blocks).
    needs_mask = num_cores * steps_per_core * block_rows != rows

    def in_map(c, i):
        # Clamp so DMAs never originate past the last real block; over-covered
        # rows are zeroed by the masked tail path in-kernel.
        return (jnp.minimum(c * steps_per_core + i, blocks_total - 1), 0)

    kernel = functools.partial(
        _mse_kernel,
        block_rows=block_rows,
        chunk_rows=chunk_rows,
        steps_per_core=steps_per_core,
        valid_rows=rows,
        needs_mask=needs_mask,
    )

    block_bytes = block_rows * LANES * itemsize
    vmem_limit = int(min(max(32 << 20, 4 * block_bytes + (8 << 20)), 48 << 20))

    cost = pl.CostEstimate(
        flops=3 * n_main,
        transcendentals=0,
        bytes_accessed=2 * n_main * itemsize + num_cores * SUB * LANES * 4,
    )

    partials = pl.pallas_call(
        kernel,
        out_shape=jax.ShapeDtypeStruct((num_cores * SUB, LANES), jnp.float32),
        grid_spec=pltpu.PrefetchScalarGridSpec(
            num_scalar_prefetch=0,
            grid=(num_cores, steps_per_core),
            in_specs=[
                pl.BlockSpec((block_rows, LANES), in_map),
                pl.BlockSpec((block_rows, LANES), in_map),
            ],
            out_specs=pl.BlockSpec((SUB, LANES), lambda c, i: (c, 0)),
            scratch_shapes=[pltpu.VMEM((SUB, LANES), jnp.float32)],
        ),
        compiler_params=pltpu.CompilerParams(
            # TODO(synk): on v7x, verify via trace that this axis shards across
            # both TensorCores; if not, switch it to pltpu.CORE_PARALLEL.
            dimension_semantics=("parallel", "arbitrary"),
            vmem_limit_bytes=vmem_limit,
        ),
        cost_estimate=cost,
    )(p2d, t2d)

    # Single final cross-lane/sublane reduce (tiny) + tail + divide by true n.
    return (jnp.sum(partials) + tail_sum) / n


if __name__ == "__main__":
    key = jax.random.PRNGKey(0)
    k1, k2 = jax.random.split(key)

    # Primary test: lane-aligned case (2*4*16*16 = 2048 elements).
    shape = (2, 4, 16, 16)
    u_pred = jax.random.normal(k1, shape, dtype=jnp.float32)
    u_true = jax.random.normal(k2, shape, dtype=jnp.float32)

    loss = mse_loss(u_pred, u_true)
    jax.block_until_ready(loss)

    ref = jnp.mean((u_pred - u_true) ** 2)
    assert jnp.allclose(loss, ref, rtol=1e-6, atol=1e-6), (loss, ref)

    # Secondary sanity check: non-128-multiple size exercises the jnp tail path.
    k3, k4 = jax.random.split(k1)
    a = jax.random.normal(k3, (1029,), dtype=jnp.float32)
    b = jax.random.normal(k4, (1029,), dtype=jnp.float32)
    loss2 = mse_loss(a, b)
    jax.block_until_ready(loss2)
    ref2 = jnp.mean((a - b) ** 2)
    assert jnp.allclose(loss2, ref2, rtol=1e-6, atol=1e-6), (loss2, ref2)

    print("KERNEL_OK")
</pallas_src>

<mosaic_0001>
module attributes {stable_mosaic.version = 11 : i64} {
  func.func @_mse_kernel(%arg0: i32, %arg1: i32, %arg2: memref<16x128xf32, #tpu.memory_space<vmem>>, %arg3: memref<16x128xf32, #tpu.memory_space<vmem>>, %arg4: memref<8x128xf32, #tpu.memory_space<vmem>>, %arg5: memref<8x128xf32, #tpu.memory_space<vmem>>) attributes {dimension_semantics = [#tpu.dimension_semantics<parallel>, #tpu.dimension_semantics<arbitrary>], iteration_bounds = array<i64: 1, 1>, scalar_prefetch = 0 : i64, scratch_operands = 1 : i64, tpu.core_type = #tpu.core_type<tc>, window_params = [{transform_indices = @transform_0, window_bounds = array<i64: 16, 128>}, {transform_indices = @transform_1, window_bounds = array<i64: 16, 128>}, {transform_indices = @transform_2, window_bounds = array<i64: 8, 128>}]} {
    %c0_i32 = arith.constant 0 : i32
    %0 = arith.cmpi eq, %arg1, %c0_i32 : i32
    %1 = arith.extui %0 : i1 to i32
    %c0_i32_0 = arith.constant 0 : i32
    %2 = arith.cmpi ne, %1, %c0_i32_0 : i32
    scf.if %2 {
      %cst_10 = arith.constant 0.000000e+00 : f32
      %15 = vector.broadcast %cst_10 : f32 to vector<8x128xf32>
      %c0_11 = arith.constant 0 : index
      %c0_12 = arith.constant 0 : index
      %16 = vector.load %arg5[%c0_11, %c0_12] : memref<8x128xf32, #tpu.memory_space<vmem>>, vector<8x128xf32>
      tpu.vector_store %arg5[%c0_11, %c0_12], %15 {strides = array<i32>} : memref<8x128xf32, #tpu.memory_space<vmem>>, vector<8x128xf32>,
    } else {
    }
    %c0 = arith.constant 0 : index
    %c0_1 = arith.constant 0 : index
    %3 = vector.load %arg2[%c0, %c0_1] : memref<16x128xf32, #tpu.memory_space<vmem>>, vector<16x128xf32>
    %c0_2 = arith.constant 0 : index
    %c0_3 = arith.constant 0 : index
    %4 = vector.load %arg3[%c0_2, %c0_3] : memref<16x128xf32, #tpu.memory_space<vmem>>, vector<16x128xf32>
    %5 = arith.subf %3, %4 : vector<16x128xf32>
    %6 = arith.mulf %5, %5 : vector<16x128xf32>
    %c0_4 = arith.constant 0 : index
    %c0_5 = arith.constant 0 : index
    %7 = vector.load %arg5[%c0_4, %c0_5] : memref<8x128xf32, #tpu.memory_space<vmem>>, vector<8x128xf32>
    %8 = vector.shape_cast %6 : vector<16x128xf32> to vector<2x8x128xf32>
    %cst = arith.constant dense<0.000000e+00> : vector<8x128xf32>
    %9 = vector.multi_reduction <add>, %8, %cst [0] : vector<2x8x128xf32> to vector<8x128xf32>
    %10 = arith.addf %7, %9 : vector<8x128xf32>
    %c0_6 = arith.constant 0 : index
    %c0_7 = arith.constant 0 : index
    %11 = vector.load %arg5[%c0_6, %c0_7] : memref<8x128xf32, #tpu.memory_space<vmem>>, vector<8x128xf32>
    tpu.vector_store %arg5[%c0_6, %c0_7], %10 {strides = array<i32>} : memref<8x128xf32, #tpu.memory_space<vmem>>, vector<8x128xf32>,
    %c0_i32_8 = arith.constant 0 : i32
    %12 = arith.cmpi eq, %arg1, %c0_i32_8 : i32
    %13 = arith.extui %12 : i1 to i32
    %c0_i32_9 = arith.constant 0 : i32
    %14 = arith.cmpi ne, %13, %c0_i32_9 : i32
    scf.if %14 {
      %c0_10 = arith.constant 0 : index
      %c0_11 = arith.constant 0 : index
      %15 = vector.load %arg5[%c0_10, %c0_11] : memref<8x128xf32, #tpu.memory_space<vmem>>, vector<8x128xf32>
      %c0_12 = arith.constant 0 : index
      %c0_13 = arith.constant 0 : index
      %16 = vector.load %arg4[%c0_12, %c0_13] : memref<8x128xf32, #tpu.memory_space<vmem>>, vector<8x128xf32>
      tpu.vector_store %arg4[%c0_12, %c0_13], %15 {strides = array<i32>} : memref<8x128xf32, #tpu.memory_space<vmem>>, vector<8x128xf32>,
    } else {
    }
    return
  }
  func.func @transform_0(%arg0: i32, %arg1: i32) -> (i32, i32) {
    %c1_i32 = arith.constant 1 : i32
    %0 = arith.muli %arg0, %c1_i32 : i32
    %1 = arith.addi %0, %arg1 : i32
    %c0_i32 = arith.constant 0 : i32
    %2 = arith.minsi %1, %c0_i32 : i32
    %c0_i32_0 = arith.constant 0 : i32
    %c0_i32_1 = arith.constant 0 : i32
    return %2, %c0_i32_0 : i32, i32
  }
  func.func @transform_1(%arg0: i32, %arg1: i32) -> (i32, i32) {
    %c1_i32 = arith.constant 1 : i32
    %0 = arith.muli %arg0, %c1_i32 : i32
    %1 = arith.addi %0, %arg1 : i32
    %c0_i32 = arith.constant 0 : i32
    %2 = arith.minsi %1, %c0_i32 : i32
    %c0_i32_0 = arith.constant 0 : i32
    %c0_i32_1 = arith.constant 0 : i32
    return %2, %c0_i32_0 : i32, i32
  }
  func.func @transform_2(%arg0: i32, %arg1: i32) -> (i32, i32) {
    %c0_i32 = arith.constant 0 : i32
    %c0_i32_0 = arith.constant 0 : i32
    return %arg0, %c0_i32 : i32, i32
  }
}

</mosaic_0001>

<bundles_post_ra>
// kernel: tpu_custom_call.1
= control target key start
LH: loop header
LB: loop body
LE: loop exit
PB: predicated region body
PF: predicated region fallthrough
CT: control target
= control target key end

     0   :  { %7 = vsyncpa [#allocation4], 0  ;;  %s235_s0 = inlined_call_operand.hbm [shape: f32[16,128], index: 0, kind: input, shape index: {}]   ;;  %s236_s1 = inlined_call_operand.hbm [shape: f32[16,128], index: 1, kind: input, shape index: {}]   ;;  %s237_s2 = inlined_call_operand.hbm [shape: f32[8,128], index: 2, kind: output, shape index: {}]  }
   0x1   :  { %8 = vsyncpa [#allocation7], 0 }
   0x2   :  { %9 = vsyncpa [#allocation5], 0  ;;  %s179_s9 = smov [#allocation3]   ;;  %s107_s13 = scalar_lea.hbm %s235_s0, 256 }
   0x3   :  { %s21_s10 = sshll.u32 %s179_s9, 4  ;;  %p108_p0 = scmp.ne.s32.totalorder %s235_s0, %s107_s13  ;;  %s22_s10 = int_to_ptr.vmem [resolvable:$true] %s21_s10 }
   0x4   :  { %p111_p1 = scmp.lt.u32.totalorder %s107_s13, %s235_s0 }
   0x6   :  { %p113_p2 = pnand %p111_p1, %p108_p0 }
   0x8   :  { %116 = shalt.err (!%p113_p2)
}
   0x9   :  { %s117_s18 = scalar_lea.vmem %s22_s10, 256  ;;  %p122_p4 = scmp.lt.s32.totalorder %s22_s10, %s22_s10 }
   0xa   :  { %p118_p3 = scmp.ne.s32.totalorder %s22_s10, %s117_s18  ;;  %p123_p5 = scmp.lt.s32.totalorder %s117_s18, %s117_s18 }
   0xc   :  { %p124_p6 = por %p123_p5, %p122_p4 }
   0xe   :  { %p125_p7 = pnand %p124_p6, %p118_p3 }
  0x10   :  { %128 = shalt.err (!%p125_p7)
}
  0x11   :  { %s180_s19 = smov 128   ;;  %s181_s20 = smov 8  }
  0x12   :  { %27 = dma.hbm_to_vmem [thread:$0]  %s235_s0, 256, %s22_s10, [#allocation4], %s180_s19, %s180_s19, %s181_s20  }
  0x13   :  { %s182_s23 = smov [#allocation6]   ;;  %s129_s27 = scalar_lea.hbm %s236_s1, 256 }
  0x14   :  { %s39_s24 = sshll.u32 %s182_s23, 4  ;;  %p130_p8 = scmp.ne.s32.totalorder %s236_s1, %s129_s27  ;;  %s40_s24 = int_to_ptr.vmem [resolvable:$true] %s39_s24 }
  0x15   :  { %p133_p9 = scmp.lt.u32.totalorder %s129_s27, %s236_s1 }
  0x17   :  { %p135_p10 = pnand %p133_p9, %p130_p8 }
  0x19   :  { %138 = shalt.err (!%p135_p10)
}
  0x1a   :  { %s139_s4 = scalar_lea.vmem %s40_s24, 256  ;;  %p144_p12 = scmp.lt.s32.totalorder %s40_s24, %s40_s24 }
  0x1b   :  { %p140_p11 = scmp.ne.s32.totalorder %s40_s24, %s139_s4  ;;  %p145_p13 = scmp.lt.s32.totalorder %s139_s4, %s139_s4 }
  0x1d   :  { %p146_p0 = por %p145_p13, %p144_p12 }
  0x1f   :  { %p147_p1 = pnand %p146_p0, %p140_p11 }
  0x21   :  { %150 = shalt.err (!%p147_p1)
}
  0x22   :  { %45 = dma.hbm_to_vmem [thread:$0]  %s236_s1, 256, %s40_s24, [#allocation7], %s180_s19, %s180_s19, %s181_s20  }
  0x23   :  { %173 = dma.done.wait [#allocation4], 256  }
  0x24   :  { %174 = vsyncadd [#allocation4], 4294967040 }
  0x25   :  { %175 = dma.done.wait [#allocation7], 256  }
  0x26   :  { %176 = vsyncadd [#allocation7], 4294967040  ;;  %v65_v0 = vld [vmem:[#allocation3] sm:$0xff]  ;;  %v66_v1 = vld [vmem:[#allocation3 + $0x8] sm:$0xff]  ;;  %s183_s6 = smov [#allocation8]  }
  0x27   :  { %v67_v2 = vld [vmem:[#allocation6] sm:$0xff]  ;;  %v68_v3 = vld [vmem:[#allocation6 + $0x8] sm:$0xff]  ;;  %s88_s7 = sshll.u32 %s183_s6, 4  ;;  %s89_s7 = int_to_ptr.vmem [resolvable:$true] %s88_s7 }
  0x28   :  { %v69_v4 = vsub.f32 %v65_v0, %v67_v2  ;;  %v70_v5 = vsub.f32 %v66_v1, %v68_v3  ;;  %s151_s8 = scalar_lea.vmem %s89_s7, 128  ;;  %p156_p3 = scmp.lt.s32.totalorder %s89_s7, %s89_s7 }
  0x29   :  { %p152_p2 = scmp.ne.s32.totalorder %s89_s7, %s151_s8  ;;  %p157_p4 = scmp.lt.s32.totalorder %s151_s8, %s151_s8 }
  0x2a   :  { %v71_v6 = vmul.f32 %v69_v4, %v69_v4  ;;  %v72_v7 = vmul.f32 %v70_v5, %v70_v5 }
  0x2b   :  { %p158_p5 = por %p157_p4, %p156_p3 }
  0x2c   :  { %v74_v8 = vadd.f32 %v72_v7, %v71_v6 }
  0x2d   :  { %p159_p6 = pnand %p158_p5, %p152_p2 }
  0x2e   :  { %81 = vst [vmem:[#allocation8] sm:$0xff] %v74_v8 }
  0x2f   :  { %162 = shalt.err (!%p159_p6)
}
  0x30   :  { %s163_s10 = scalar_lea.hbm %s237_s2, 128 }
  0x31   :  { %p164_p7 = scmp.ne.s32.totalorder %s237_s2, %s163_s10  ;;  %p167_p8 = scmp.lt.u32.totalorder %s163_s10, %s237_s2 }
  0x33   :  { %p169_p9 = pnand %p167_p8, %p164_p7 }
  0x35   :  { %172 = shalt.err (!%p169_p9)
}
  0x36   :  { %91 = dma.vmem_to_hbm [thread:$0]  %s89_s7, 128, %s237_s2, [#allocation5]  }
  0x37   :  { %177 = dma.done.wait [#allocation5], 128  }
  0x38   :  { %178 = vsyncadd [#allocation5], 4294967168 }
  0x39   :  { %95 = vsyncpa [#allocation4], 1 }
  0x3a   :  { %96 = vsyncpa [#allocation7], 1 }
  0x3b   :  { %97 = vsyncpa [#allocation5], 1 }

</bundles_post_ra>
